<compile_context>
chip_gen: v7x
topology: tpu7x:2x2x1
jax: 0.10.0
libtpu: 0.0.40
codegen_flags: <defaults>
</compile_context>

<pallas_src>
import jax
import jax.numpy as jnp
from jax.experimental import pallas as pl
from jax.experimental.pallas import tpu as pltpu

EPS = 1e-6


def _round_up(x, m):
    return ((x + m - 1) // m) * m


def _pick_row_tile(R, target):
    """Row tile: multiple of 8, prefer exact division of R and >=2 grid steps (megacore)."""
    candidates = [t for t in (1024, 512, 256, 128, 64, 32, 16, 8) if t <= target and t <= R]
    for t in candidates:                       # exact division AND >=2 tiles
        if R % t == 0 and R // t >= 2:
            return t
    for t in candidates:                       # exact division, single tile
        if R % t == 0:
            return t
    # Fall back: partial last block (rows are independent; pipeline masks OOB writes).
    return max(8, min(target, _round_up(R, 8)))


def _vmem_limit_bytes():
    """Physical VMEM minus headroom, capped at 64 MiB (v7x: 64 MiB phys; v5e/v6e: 128 MiB)."""
    try:
        cap = pltpu.get_tpu_info().vmem_capacity_bytes
    except Exception:
        return 48 << 20
    return max(32 << 20, min(cap - (12 << 20), 64 << 20))


def _const_spec(shape):
    """VMEM-resident constant operand: constant index_map, single-buffered."""
    n = len(shape)
    return pl.BlockSpec(shape, lambda i: (0,) * n, pipeline_mode=pl.Buffered(1))


def _sublayer_connection_kernel(x_ref, a2_ref, b2_ref, w_ref, bias_ref, o_ref):
    # x_ref: [TR, D] row tile.  a2/b2/bias: [1, D].  w: [D, D] (VMEM-resident, bf16).
    x = x_ref[...].astype(jnp.float32)                          # [TR, D]
    d = x.shape[-1]

    # --- LayerNorm, one-pass statistics (torch: unbiased std, eps added to std) ---
    s1 = jnp.sum(x, axis=-1, keepdims=True)                     # [TR, 1]
    s2 = jnp.sum(x * x, axis=-1, keepdims=True)                 # [TR, 1]
    mean = s1 * (1.0 / d)
    var = jnp.maximum(s2 - s1 * mean, 0.0) * (1.0 / (d - 1))    # Bessel-corrected (N-1)
    inv = pl.reciprocal(jnp.sqrt(var) + EPS, approx=False)      # exact; EUP on hardware
    normed = (x - mean) * (a2_ref[...].astype(jnp.float32) * inv) \
        + b2_ref[...].astype(jnp.float32)

    # --- sublayer: Linear(D -> D) on the MXU (bf16 operands, f32 accumulation) ---
    y = jnp.dot(normed.astype(w_ref.dtype), w_ref[...],
                preferred_element_type=jnp.float32)             # [TR, D]
    y = y + bias_ref[...].astype(jnp.float32)

    # --- residual add: re-read x at the epilogue (shorter live range), single store ---
    o_ref[...] = (x_ref[...].astype(jnp.float32) + y).astype(o_ref.dtype)


def sublayer_connection(x, a2, b2, w, b, *, row_tile=None, mxu_dtype=jnp.bfloat16):
    """x: [B, S, D] -> (x + Linear(LayerNorm(x)), None)   (dropout == identity, eval mode)."""
    B, S, D = x.shape
    assert D > 1, "unbiased std (divide by D-1) requires D > 1"
    R = B * S
    x2d = x.reshape(R, D)

    target = row_tile if row_tile is not None else (512 if D <= 1024 else 256)
    tr = _pick_row_tile(R, target)
    grid = (pl.cdiv(R, tr),)

    # Feed the MXU in bf16 (native on v5e/v6e/v7x); halves W's VMEM footprint and HBM DMA.
    w_mxu = w if (mxu_dtype is None or w.dtype == mxu_dtype) else w.astype(mxu_dtype)

    out2d = pl.pallas_call(
        _sublayer_connection_kernel,
        out_shape=jax.ShapeDtypeStruct((R, D), x.dtype),
        grid=grid,
        in_specs=[
            pl.BlockSpec((tr, D), lambda i: (i, 0)),   # x rows: streamed / double-buffered
            _const_spec((1, D)),                       # a_2  : VMEM-resident, 1 buffer
            _const_spec((1, D)),                       # b_2  : VMEM-resident, 1 buffer
            _const_spec((D, D)),                       # W    : VMEM-resident, 1 buffer
            _const_spec((1, D)),                       # bias : VMEM-resident, 1 buffer
        ],
        out_specs=pl.BlockSpec((tr, D), lambda i: (i, 0)),
        compiler_params=pltpu.CompilerParams(
            dimension_semantics=("parallel",),         # shard row tiles across TCs (v7x)
            vmem_limit_bytes=_vmem_limit_bytes(),
        ),
    )(x2d, a2.reshape(1, D), b2.reshape(1, D), w_mxu, b.reshape(1, D))

    return out2d.reshape(B, S, D), None


if __name__ == "__main__":
    B, S, D = 2, 8, 128  # D multiple of 128 -> lane-dense loads/stores, full MXU rows

    key = jax.random.PRNGKey(0)
    kx, kw, kb = jax.random.split(key, 3)
    x = jax.random.normal(kx, (B, S, D), dtype=jnp.float32)

    # LayerNorm params (as in torch __init__): ones / zeros.
    a2 = jnp.ones((D,), dtype=jnp.float32)
    b2 = jnp.zeros((D,), dtype=jnp.float32)

    # Deterministic "sublayer" Linear(D, D) params.
    w = jax.random.normal(kw, (D, D), dtype=jnp.float32) * 0.05
    b = jax.random.normal(kb, (D,), dtype=jnp.float32) * 0.05

    out, prefix = sublayer_connection(x, a2, b2, w, b)
    out = jax.block_until_ready(out)

    # Pure-JAX f32 reference (unbiased std + eps-on-std, matching the torch module).
    mean = jnp.mean(x, axis=-1, keepdims=True)
    std = jnp.sqrt(jnp.sum((x - mean) ** 2, axis=-1, keepdims=True) / (D - 1))
    normed_ref = a2 * (x - mean) / (std + EPS) + b2
    ref = x + (normed_ref @ w + b)

    # Tolerance accounts only for the bf16 MXU feed (operands rounded to bf16, f32 accumulate);
    # LN / residual math is exact f32 (no approx reciprocal anymore).
    err = jnp.max(jnp.abs(out - ref))
    assert jnp.allclose(out, ref, atol=1e-2, rtol=1e-2), f"mismatch vs reference (max abs err={err})"
    assert prefix is None

    print("KERNEL_OK")
</pallas_src>

<mosaic_0001>
module attributes {stable_mosaic.version = 11 : i64} {
  func.func @_sublayer_connection_kernel(%arg0: i32, %arg1: memref<8x128xf32, #tpu.memory_space<vmem>>, %arg2: memref<1x128xf32, #tpu.memory_space<vmem>>, %arg3: memref<1x128xf32, #tpu.memory_space<vmem>>, %arg4: memref<128x128xbf16, #tpu.memory_space<vmem>>, %arg5: memref<1x128xf32, #tpu.memory_space<vmem>>, %arg6: memref<8x128xf32, #tpu.memory_space<vmem>>) attributes {dimension_semantics = [#tpu.dimension_semantics<parallel>], iteration_bounds = array<i64: 2>, scalar_prefetch = 0 : i64, scratch_operands = 0 : i64, tpu.core_type = #tpu.core_type<tc>, window_params = [{transform_indices = @transform_0, window_bounds = array<i64: 8, 128>}, {pipeline_mode = #tpu.pipeline_mode<synchronous>, transform_indices = @transform_1, window_bounds = array<i64: 1, 128>}, {pipeline_mode = #tpu.pipeline_mode<synchronous>, transform_indices = @transform_2, window_bounds = array<i64: 1, 128>}, {pipeline_mode = #tpu.pipeline_mode<synchronous>, transform_indices = @transform_3, window_bounds = array<i64: 128, 128>}, {pipeline_mode = #tpu.pipeline_mode<synchronous>, transform_indices = @transform_4, window_bounds = array<i64: 1, 128>}, {transform_indices = @transform_5, window_bounds = array<i64: 8, 128>}]} {
    %c0 = arith.constant 0 : index
    %c0_0 = arith.constant 0 : index
    %0 = vector.load %arg1[%c0, %c0_0] : memref<8x128xf32, #tpu.memory_space<vmem>>, vector<8x128xf32>
    %cst = arith.constant dense<0.000000e+00> : vector<8xf32>
    %1 = vector.multi_reduction <add>, %0, %cst [1] : vector<8x128xf32> to vector<8xf32>
    %2 = vector.shape_cast %1 : vector<8xf32> to vector<8x1xf32>
    %3 = arith.mulf %0, %0 : vector<8x128xf32>
    %cst_1 = arith.constant dense<0.000000e+00> : vector<8xf32>
    %4 = vector.multi_reduction <add>, %3, %cst_1 [1] : vector<8x128xf32> to vector<8xf32>
    %5 = vector.shape_cast %4 : vector<8xf32> to vector<8x1xf32>
    %cst_2 = arith.constant 7.812500e-03 : f32
    %6 = vector.broadcast %cst_2 : f32 to vector<8x1xf32>
    %7 = arith.mulf %2, %6 : vector<8x1xf32>
    %8 = arith.mulf %2, %7 : vector<8x1xf32>
    %9 = arith.subf %5, %8 : vector<8x1xf32>
    %cst_3 = arith.constant 0.000000e+00 : f32
    %10 = vector.broadcast %cst_3 : f32 to vector<8x1xf32>
    %11 = arith.maximumf %9, %10 : vector<8x1xf32>
    %cst_4 = arith.constant 0.00787401571 : f32
    %12 = vector.broadcast %cst_4 : f32 to vector<8x1xf32>
    %13 = arith.mulf %11, %12 : vector<8x1xf32>
    %14 = math.sqrt %13 : vector<8x1xf32>
    %cst_5 = arith.constant 9.99999997E-7 : f32
    %15 = vector.broadcast %cst_5 : f32 to vector<8x1xf32>
    %16 = arith.addf %14, %15 : vector<8x1xf32>
    %17 = tpu.reciprocal %16 : vector<8x1xf32> -> vector<8x1xf32>
    %18 = vector.broadcast %7 : vector<8x1xf32> to vector<8x128xf32>
    %19 = arith.subf %0, %18 : vector<8x128xf32>
    %c0_6 = arith.constant 0 : index
    %c0_7 = arith.constant 0 : index
    %20 = vector.load %arg2[%c0_6, %c0_7] : memref<1x128xf32, #tpu.memory_space<vmem>>, vector<1x128xf32>
    %21 = vector.broadcast %20 : vector<1x128xf32> to vector<8x128xf32>
    %22 = vector.broadcast %17 : vector<8x1xf32> to vector<8x128xf32>
    %23 = arith.mulf %21, %22 : vector<8x128xf32>
    %24 = arith.mulf %19, %23 : vector<8x128xf32>
    %c0_8 = arith.constant 0 : index
    %c0_9 = arith.constant 0 : index
    %25 = vector.load %arg3[%c0_8, %c0_9] : memref<1x128xf32, #tpu.memory_space<vmem>>, vector<1x128xf32>
    %26 = vector.broadcast %25 : vector<1x128xf32> to vector<8x128xf32>
    %27 = arith.addf %24, %26 : vector<8x128xf32>
    %28 = arith.truncf %27 : vector<8x128xf32> to vector<8x128xbf16>
    %c0_10 = arith.constant 0 : index
    %c0_11 = arith.constant 0 : index
    %29 = vector.load %arg4[%c0_10, %c0_11] : memref<128x128xbf16, #tpu.memory_space<vmem>>, vector<128x128xbf16>
    %cst_12 = arith.constant dense<0.000000e+00> : vector<8x128xf32>
    %30 = tpu.matmul %28, %29, %cst_12 {dimension_numbers = #tpu.dot_dimension_numbers<[1], [0], [0], [1], [0, 0, 1, 1], [], []>} : vector<8x128xbf16>, vector<128x128xbf16>, vector<8x128xf32> -> vector<8x128xf32>
    %c0_13 = arith.constant 0 : index
    %c0_14 = arith.constant 0 : index
    %31 = vector.load %arg5[%c0_13, %c0_14] : memref<1x128xf32, #tpu.memory_space<vmem>>, vector<1x128xf32>
    %32 = vector.broadcast %31 : vector<1x128xf32> to vector<8x128xf32>
    %33 = arith.addf %30, %32 : vector<8x128xf32>
    %c0_15 = arith.constant 0 : index
    %c0_16 = arith.constant 0 : index
    %34 = vector.load %arg1[%c0_15, %c0_16] : memref<8x128xf32, #tpu.memory_space<vmem>>, vector<8x128xf32>
    %35 = arith.addf %34, %33 : vector<8x128xf32>
    %c0_17 = arith.constant 0 : index
    %c0_18 = arith.constant 0 : index
    %36 = vector.load %arg6[%c0_17, %c0_18] : memref<8x128xf32, #tpu.memory_space<vmem>>, vector<8x128xf32>
    tpu.vector_store %arg6[%c0_17, %c0_18], %35 {strides = array<i32>} : memref<8x128xf32, #tpu.memory_space<vmem>>, vector<8x128xf32>,
    return
  }
  func.func @transform_0(%arg0: i32) -> (i32, i32) {
    %c0_i32 = arith.constant 0 : i32
    %c0_i32_0 = arith.constant 0 : i32
    return %arg0, %c0_i32 : i32, i32
  }
  func.func @transform_1(%arg0: i32) -> (i32, i32) {
    %c0_i32 = arith.constant 0 : i32
    %c0_i32_0 = arith.constant 0 : i32
    %c0_i32_1 = arith.constant 0 : i32
    return %c0_i32, %c0_i32_0 : i32, i32
  }
  func.func @transform_2(%arg0: i32) -> (i32, i32) {
    %c0_i32 = arith.constant 0 : i32
    %c0_i32_0 = arith.constant 0 : i32
    %c0_i32_1 = arith.constant 0 : i32
    return %c0_i32, %c0_i32_0 : i32, i32
  }
  func.func @transform_3(%arg0: i32) -> (i32, i32) {
    %c0_i32 = arith.constant 0 : i32
    %c0_i32_0 = arith.constant 0 : i32
    %c0_i32_1 = arith.constant 0 : i32
    return %c0_i32, %c0_i32_0 : i32, i32
  }
  func.func @transform_4(%arg0: i32) -> (i32, i32) {
    %c0_i32 = arith.constant 0 : i32
    %c0_i32_0 = arith.constant 0 : i32
    %c0_i32_1 = arith.constant 0 : i32
    return %c0_i32, %c0_i32_0 : i32, i32
  }
  func.func @transform_5(%arg0: i32) -> (i32, i32) {
    %c0_i32 = arith.constant 0 : i32
    %c0_i32_0 = arith.constant 0 : i32
    return %arg0, %c0_i32 : i32, i32
  }
}

</mosaic_0001>

<bundles_post_ra>
// kernel: tpu_custom_call.1
= control target key start
LH: loop header
LB: loop body
LE: loop exit
PB: predicated region body
PF: predicated region fallthrough
CT: control target
= control target key end

     0   :  { %10 = vsyncpa [#allocation3], 0  ;;  %s1012_s0 = inlined_call_operand.hbm [shape: f32[16,128], index: 0, kind: input, shape index: {}]   ;;  %s1013_s1 = inlined_call_operand.vmem [shape: f32[1,128], index: 1, kind: input, shape index: {}]   ;;  %s1014_s2 = inlined_call_operand.vmem [shape: f32[1,128], index: 2, kind: input, shape index: {}]   ;;  %s1015_s3 = inlined_call_operand.hbm [shape: bf16[128,128], index: 3, kind: input, shape index: {}]   ;;  %s1016_s4 = inlined_call_operand.vmem [shape: f32[1,128], index: 4, kind: input, shape index: {}]   ;;  %s1017_s5 = inlined_call_operand.hbm [shape: f32[16,128], index: 5, kind: output, shape index: {}]  }
   0x1   :  { %12 = vsyncpa [#allocation3 + $0x1], 0 }
   0x2   :  { %13 = vsyncpa [#allocation6], 0 }
   0x3   :  { %14 = vsyncpa [#allocation4], 0 }
   0x4   :  { %16 = vsyncpa [#allocation4 + $0x1], 0  ;;  %s796_s18 = smov 0   ;;  %s798_s19 = smov 0  }
   0x5   :  { %s800_s20 = smov 0   ;;  %s802_s21 = smov 0  }
   0x6 LB: > { %s817_s22 = sadd.s32 4294967295, %s757_s21   ;;  %s502_s23 = sadd.s32 4294967294, %s757_s21   ;;  %s757_s21 = sphi %s802_s21, %s1037_s21   ;;  %s753_s20 = sphi %s800_s20, %s1036_s20   ;;  %s749_s19 = sphi %s798_s19, %s1035_s19   ;;  %s745_s18 = sphi %s796_s18, %s1034_s18  }
   0x7   : > { %p42_p0 = scmp.ne.s32.totalorder %s749_s19, %s745_s18  ;;  %p1018_p1 = scmp.eq.s32.totalorder %s817_s22, 0 }
   0x8   : > { %p156_p3 = scmp.eq.s32.totalorder %s502_s23, 1  ;;  %p503_p5 = scmp.ge.s32.totalorder %s757_s21, 1 }
   0x9   : > { %p826_p4 = por %p1018_p1, %p42_p0  ;;  %p163_p7 = scmp.lt.s32.totalorder %s757_s21, 3 }
   0xa   : > { %p831_p6 = por %p156_p3, %p42_p0  ;;  %s759_s27 = smov [#allocation5]  }
   0xb   : > { %s1021_s24 = scalar_select %p826_p4, 1, 0 }
   0xc   : > { %s1022_s25 = scalar_select %p831_p6, 1, 0 }
   0xd   : > { %p836_p8 = pnand %p503_p5, %p163_p7  ;;  %s181_s28 = sshll.u32 %s759_s27, 4  ;;  %s840_s28 = int_to_ptr.vmem [resolvable:$true] %s181_s28 }
   0xe   : > { %s852_s30 = sadd.s32 1, %s757_s21   ;;  %s29_s6 = sadd.s32 1, %s753_s20 }
   0xf   : > { %s1023_s26 = scalar_select %p836_p8, 1, 0 }
  0x10   : > { %p564_p9 = pneg %p836_p8  ;;  %s26_s7 = ssub.s32 %s757_s21, %s852_s30 }
  0x11   : > { %s629_s10 = scalar_lea.hbm %s1015_s3, 1024 }
  0x12   : > { %p847_p11 = pnand %p564_p9, %p1018_p1  ;;  %p630_p12 = scmp.ne.s32.totalorder %s1015_s3, %s629_s10 }
  0x13   : > { %p636_p5 = scmp.lt.u32.totalorder %s629_s10, %s1015_s3 }
  0x14   : > { %p631_p13 = pneg %p847_p11 }
  0x16   : > { %p632_p0 = pnand %p631_p13, %p630_p12 }
  0x18   : > { %p633_p3 = pneg %p632_p0 }
  0x1a   : > { %p638_p7 = pnand %p636_p5, %p633_p3 }
  0x1c   : > { %641 = shalt.err (!%p638_p7)
}
  0x1d   : > { %s642_s15 = scalar_lea.vmem %s840_s28, 1024  ;;  %p650_p2 = scmp.lt.s32.totalorder %s840_s28, %s840_s28 }
  0x1e   : > { %p643_p9 = scmp.ne.s32.totalorder %s840_s28, %s642_s15  ;;  %p651_p6 = scmp.lt.s32.totalorder %s642_s15, %s642_s15 }
  0x20   : > { %p645_p10 = pnand %p643_p9, %p631_p13  ;;  %p652_p4 = por %p651_p6, %p650_p2 }
  0x22   : > { %p646_p1 = pneg %p645_p10 }
  0x24   : > { %p653_p8 = pnand %p652_p4, %p646_p1 }
  0x26   : > { %656 = shalt.err (!%p653_p8)
}
  0x27   : > { %s760_s16 = smov 64   ;;  %s761_s17 = smov 4  }
  0x28   : > { %567 = dma.hbm_to_vmem [thread:$0]  (!%p847_p11), %s1015_s3, 1024, %s840_s28, [#allocation6], %s760_s16, %s760_s16, %s761_s17  }
  0x29   : > { %p27_p2 = scmp.eq.s32.totalorder %s26_s7, 0  ;;  %p36_p1 = scmp.ne.s32.totalorder %s753_s20, %s749_s19 }
  0x2a   : > { %p37_p4 = scmp.eq.s32.totalorder %s757_s21, 0  ;;  %p577_p6 = scmp.lt.s32.totalorder %s757_s21, 2 }
  0x2b   : > { %s883_s8 = scalar_select %p27_p2, %s753_s20, %s29_s6  }
  0x2c   : > { %p38_p8 = por %p37_p4, %p36_p1  ;;  %p1025_p10 = scmp.eq.s32.totalorder %s817_s22, 1 }
  0x2d   : > { %s198_s10 = sand.u32 1, %s753_s20   ;;  %s507_s11 = sshll.u32 %s757_s21, 7 }
  0x2e   : > { %p887_p12 = por %p1025_p10, %p36_p1  ;;  %s506_s12 = sshll.u32 %s198_s10, 3 }
  0x2f   : > { %s896_s14 = scalar_lea.hbm %s1012_s0, %s507_s11  ;;  %s202_s28 = scalar_lea.vmem [#allocation2], %s506_s12 }
  0x30   : > { %s209_s6 = sshll.u32 %s202_s28, 4  ;;  %p898_p11 = pnand %p577_p6, %p38_p8  ;;  %s902_s6 = int_to_ptr.vmem [resolvable:$true] %s209_s6 }
  0x31   : > { %s199_s15 = scalar_lea.sflag [#allocation3], %s198_s10  ;;  %s657_s16 = scalar_lea.hbm %s896_s14, 128 }
  0x32   : > { %p658_p13 = scmp.ne.s32.totalorder %s896_s14, %s657_s16  ;;  %p659_p0 = pneg %p898_p11 }
  0x33   : > { %s662_s27 = scalar_lea.hbm %s1012_s0, 256  ;;  %p663_p7 = scmp.lt.u32.totalorder %s896_s14, %s1012_s0 }
  0x34   : > { %p660_p3 = pnand %p659_p0, %p658_p13  ;;  %p664_p9 = scmp.lt.u32.totalorder %s662_s27, %s657_s16 }
  0x35   : > { %p666_p1 = scmp.lt.u32.totalorder %s657_s16, %s896_s14 }
  0x36   : > { %p661_p5 = pneg %p660_p3  ;;  %p665_p2 = por %p664_p9, %p663_p7 }
  0x38   : > { %p667_p4 = por %p666_p1, %p665_p2 }
  0x3a   : > { %p668_p6 = pnand %p667_p4, %p661_p5 }
  0x3c   : > { %671 = shalt.err (!%p668_p6)
}
  0x3d   : > { %s672_s10 = scalar_lea.vmem %s902_s6, 128  ;;  %s762_s29 = smov [#allocation2]  }
  0x3e   : > { %p673_p8 = scmp.ne.s32.totalorder %s902_s6, %s672_s10  ;;  %s677_s13 = sshll.u32 %s762_s29, 4  ;;  %s678_s13 = int_to_ptr.vmem [resolvable:$false] %s677_s13 }
  0x3f   : > { %s679_s28 = scalar_lea.vmem %s678_s13, 256  ;;  %p680_p3 = scmp.lt.s32.totalorder %s902_s6, %s678_s13 }
  0x40   : > { %p675_p10 = pnand %p673_p8, %p659_p0  ;;  %p681_p7 = scmp.lt.s32.totalorder %s679_s28, %s672_s10 }
  0x42   : > { %p676_p13 = pneg %p675_p10  ;;  %p682_p9 = por %p681_p7, %p680_p3 }
  0x44   : > { %p683_p2 = pnand %p682_p9, %p676_p13 }
  0x46   : > { %686 = shalt.err (!%p683_p2)
}
  0x47   : > { %571 = dma.hbm_to_vmem [thread:$0]  (!%p898_p11), %s896_s14, 128, %s902_s6, %s199_s15  }
  0x48   : > { %p1028_p5 = scmp.ne.s32.totalorder %s1023_s26, 0 }
  0x49   : > { %s932_s16 = sand.u32 (!%p1028_p5), 1, %s749_s19   ;;  %p1029_p0 = scmp.ne.s32.totalorder (!%p1028_p5), %s1021_s24, 0 }
  0x4a   : > { %218 = sbr.rel (%p1028_p5) target bundleno = 504 (0x1f8), region = 40  ;;  %s509_s17 = sshll.u32 (!%p1028_p5), %s932_s16, 3 }
  0x4b   : > { %s221_s23 = scalar_lea.sflag (!%p1028_p5), [#allocation3], %s932_s16  ;;  %s224_s27 = scalar_lea.vmem (!%p1028_p5), [#allocation2], %s509_s17 }
  0x51   : > { %732 = dma.done.wait (%p1029_p0), %s221_s23, 128  }
  0x52   : > { %734 = vsyncadd (%p1029_p0), %s221_s23, 4294967168  ;;  %p1030_p11 = scmp.eq.s32.totalorder %s817_s22, 0 }
  0x54   : > { %736 = dma.done.wait (%p1030_p11), [#allocation6], 1024   ;;  %p1031_p1 = pmov %p1030_p11 }
  0x55   : > { %v946_v0 = vld [vmem:[%s224_s27] sm:$0xff]  ;;  %v617_v2 = vld [vmem:[#allocation5] sm:$0xff]   ;;  %v763_v3 = vmov 0.0   ;;  %v618_v4 = vld [vmem:[#allocation5 + $0x8] sm:$0xff]   ;;  %vm764_vm0 = vmmov 0   ;;  %s524_s11 = sshll.u32 %s817_s22, 7 }
  0x56   : > { %738 = vsyncadd (%p1031_p1), [#allocation6], 4294966272  ;;  %257 = vadd.xlane.f32.xlu0 %v946_v0  ;;  %v259_v1 = vmul.f32 %v946_v0, %v946_v0  ;;  %536 = vmatprep.subr.bf16.mxu0 %v763_v3  ;;  %v619_v5 = vld [vmem:[#allocation5 + $0x10] sm:$0xff]   ;;  %v620_v6 = vld [vmem:[#allocation5 + $0x18] sm:$0xff]   ;;  %s254_s12 = scalar_lea.vmem [#allocation7], %s509_s17  ;;  %s968_s28 = scalar_lea.hbm %s1017_s5, %s524_s11 }
  0x57   : > { %537 = vmatpush3.bf16.msra.mxu0 %v617_v2  ;;  %552 = vmatprep.mubr.msk.bf16.mxu0 %vm764_vm0, %v763_v3  ;;  %v621_v7 = vld [vmem:[#allocation5 + $0x20] sm:$0xff]   ;;  %v622_v8 = vld [vmem:[#allocation5 + $0x28] sm:$0xff]   ;;  %v623_v9 = vld [vmem:[#allocation5 + $0x30] sm:$0xff]   ;;  %s422_s10 = sshll.u32 %s254_s12, 4  ;;  %s409_s22 = scalar_lea.sflag [#allocation4], %s932_s16  ;;  %s970_s10 = int_to_ptr.vmem [resolvable:$true] %s422_s10 }
  0x58   : > { %538 = vmatprep.subr.bf16.mxu0 %v763_v3  ;;  %v624_v10 = vld [vmem:[#allocation5 + $0x38] sm:$0xff]   ;;  %v512_v24 = vld [vmem:[%s1013_s1] ss:$0 sm:$0xff]  ;;  %s687_s17 = scalar_lea.vmem %s970_s10, 128  ;;  %s765_s23 = smov [#allocation7]  }
  0x59   : > { %v513_v28 = vld [vmem:[%s1014_s2] ss:$0 sm:$0xff]  ;;  %p688_p4 = scmp.ne.s32.totalorder %s970_s10, %s687_s17  ;;  %s691_s27 = sshll.u32 %s765_s23, 4  ;;  %s692_s27 = int_to_ptr.vmem [resolvable:$false] %s691_s27 }
  0x5a   : > { %260 = vadd.xlane.f32.xlu0 %v259_v1  ;;  %v514_v32 = vld [vmem:[%s1016_s4] ss:$0 sm:$0xff]  ;;  %s693_s24 = scalar_lea.vmem %s692_s27, 256  ;;  %p694_p10 = scmp.lt.s32.totalorder %s970_s10, %s692_s27 }
  0x5b   : > { %539 = vmatpush3.bf16.msra.mxu0 %v618_v4  ;;  %p689_p6 = pnand %p688_p4, %p887_p12  ;;  %p695_p13 = scmp.lt.s32.totalorder %s693_s24, %s687_s17 }
  0x5c   : > { %540 = vmatprep.subr.bf16.mxu0 %v763_v3 }
  0x5d   : > { %p690_p8 = pneg %p689_p6  ;;  %p696_p3 = por %p695_p13, %p694_p10 }
  0x5f   : > { %541 = vmatpush3.bf16.msra.mxu0 %v619_v5  ;;  %p697_p7 = pnand %p696_p3, %p690_p8 }
  0x60   : > { %542 = vmatprep.subr.bf16.mxu0 %v763_v3 }
  0x63   : > { %543 = vmatpush3.bf16.msra.mxu0 %v620_v6 }
  0x64   : > { %544 = vmatprep.subr.bf16.mxu0 %v763_v3 }
  0x67   : > { %545 = vmatpush3.bf16.msra.mxu0 %v621_v7 }
  0x68   : > { %546 = vmatprep.subr.bf16.mxu0 %v763_v3 }
  0x6b   : > { %547 = vmatpush3.bf16.msra.mxu0 %v622_v8 }
  0x6c   : > { %548 = vmatprep.subr.bf16.mxu0 %v763_v3 }
  0x6f   : > { %549 = vmatpush3.bf16.msra.mxu0 %v623_v9 }
  0x70   : > { %550 = vmatprep.subr.bf16.mxu0 %v763_v3 }
  0x73   : > { %551 = vmatpush3.bf16.msra.mxu0 %v624_v10 }
  0xe3   : > { %v258_v11 = vpop.xlane.xlu0 %257 }
  0xe4   : > { %v262_v12 = vmul.f32 0.0078125, %v258_v11 }
  0xe6   : > { %v263_v13 = vmul.f32 %v262_v12, %v258_v11  ;;  %v276_v26 = vsub.f32 %v946_v0, %v262_v12 }
  0xe7   : > { %v261_v14 = vpop.xlane.xlu0 %260 }
  0xe8   : > { %v264_v15 = vsub.f32 %v261_v14, %v263_v13 }
  0xea   : > { %v265_v16 = vmax.f32 %v264_v15, 0.0 }
  0xec   : > { %v266_v17 = vmul.f32 0.007874016, %v265_v16 }
  0xee   : > { %625 = vrsqrt.f32 %v266_v17  ;;  %vm269_vm1 = vcmp.eq.f32.partialorder %v266_v17, inf  ;;  %v272_v20 = vand.u32 2147483648, %v266_v17  ;;  %vm271_vm2 = vcmp.eq.f32.partialorder %v266_v17, 0.0 }
  0xf8   : > { %v626_v18 = vpop.eup %625 }
  0xf9   : > { %v268_v19 = vmul.f32 %v626_v18, %v266_v17 }
  0xfb   : > { %v270_v21 = vsel %vm269_vm1, %v266_v17, %v268_v19 }
  0xfc   : > { %v273_v22 = vsel %vm271_vm2, %v272_v20, %v270_v21 }
  0xfd   : > { %v274_v23 = vadd.f32 1e-06, %v273_v22 }
  0xff   : > { %627 = vrcp.f32 %v274_v23 }
 0x109   : > { %v628_v25 = vpop.eup %627 }
 0x10a   : > { %v284_v27 = vmul.f32 %v628_v25, %v512_v24 }
 0x10c   : > { %v285_v29 = vmul.f32 %v284_v27, %v276_v26 }
 0x10e   : > { %v293_v30 = vadd.f32 %v513_v28, %v285_v29 }
 0x110   : > { %v294_v31 = vpack.c.bf16 %v293_v30, %v293_v30 }
 0x112   : > { %553 = vmatmul.mubr.bf16.vlgmr.msra.gmra.mrb[0].mxu0 %v294_v31 }
 0x1e5   : > { %v400_v33 = vpop.f32.mrb[0].mxu0 }
 0x1e6   : > { %v401_v34 = vadd.f32 %v514_v32, %v400_v33  ;;  %v554_v35 = vpop.f32.mrb[1].mxu0 }
 0x1e7   : > { %v403_v36 = vpop.f32.mrb[2].mxu0 }
 0x1e8   : > { %v406_v37 = vadd.f32 %v401_v34, %v946_v0  ;;  %v555_v38 = vpop.f32.mrb[3].mxu0 }
 0x1ea   : > { %407 = vst [vmem:[%s254_s12] sm:$0xff] %v406_v37 }
 0x1eb   : > { %700 = shalt.err (!%p697_p7)
}
 0x1ec   : > { %s701_s16 = scalar_lea.hbm %s968_s28, 128  ;;  %s705_s6 = scalar_lea.hbm %s1017_s5, 256 }
 0x1ed   : > { %p702_p9 = scmp.ne.s32.totalorder %s968_s28, %s701_s16  ;;  %p706_p0 = scmp.lt.u32.totalorder %s968_s28, %s1017_s5 }
 0x1ee   : > { %p707_p11 = scmp.lt.u32.totalorder %s705_s6, %s701_s16  ;;  %p709_p4 = scmp.lt.u32.totalorder %s701_s16, %s968_s28 }
 0x1ef   : > { %p703_p2 = pnand %p702_p9, %p887_p12 }
 0x1f0   : > { %p708_p1 = por %p707_p11, %p706_p0 }
 0x1f1   : > { %p704_p5 = pneg %p703_p2 }
 0x1f2   : > { %p710_p6 = por %p709_p4, %p708_p1 }
 0x1f4   : > { %p711_p8 = pnand %p710_p6, %p704_p5 }
 0x1f6   : > { %714 = shalt.err (!%p711_p8)
}
 0x1f7   : > { %562 = dma.vmem_to_hbm [thread:$0]  (%p887_p12), %s970_s10, 128, %s968_s28, %s409_s22  }
 0x1f8 PF: > { %s434_s11 = sand.u32 1, %s745_s18   ;;  %p1032_p10 = scmp.ne.s32.totalorder %s1022_s25, 0 }
 0x1f9   : > { %p1033_p13 = scmp.ge.s32.totalorder %s757_s21, 2  ;;  %s435_s12 = scalar_lea.sflag [#allocation4], %s434_s11 }
 0x1fb   : > { %p573_p3 = pnand %p1033_p13, %p1032_p10 }
 0x1fd   : > { %740 = dma.done.wait (!%p573_p3), %s435_s12, 128  }
 0x1fe   : > { %742 = vsyncadd (!%p573_p3), %s435_s12, 4294967168  ;;  %p19_p7 = scmp.ge.s32.totalorder %s852_s30, 4   ;;  %s1034_s18 = smov %s749_s19 }
 0x1ff   : > { %s1035_s19 = smov %s753_s20  ;;  %s1036_s20 = smov %s883_s8 }
 0x200   : > { %s1037_s21 = smov %s852_s30  ;;  %21 = sbr.rel (!%p19_p7) target bundleno = 6 (0x6), region = 89 }
 0x207   :  { %440 = vsyncpa [#allocation3], 1 }
 0x208   :  { %442 = vsyncpa [#allocation3 + $0x1], 1 }
 0x209   :  { %443 = vsyncpa [#allocation6], 1 }
 0x20a   :  { %444 = vsyncpa [#allocation4], 1 }
 0x20b   :  { %446 = vsyncpa [#allocation4 + $0x1], 1 }

</bundles_post_ra>
